<compile_context>
chip_gen: v7x
topology: tpu7x:2x2x1
jax: 0.10.0
libtpu: 0.0.40
codegen_flags: <defaults>
</compile_context>

<pallas_src>
import jax
import jax.numpy as jnp
from jax.experimental import pallas as pl
from jax.experimental.pallas import tpu as pltpu

_SMALL_BYTES = 1 << 20  # below ~1 MiB, kernel launch overhead dominates the copy


def _hbm_copy_kernel(x_hbm, o_hbm, sem):
    # Single whole-array HBM->HBM DMA: no VMEM staging, no grid, no vld/vst.
    cp = pltpu.make_async_copy(x_hbm, o_hbm, sem)
    cp.start()
    cp.wait()


def identity_copy_pallas(x, *, alias_input=False, force_kernel=False):
    """Materialized identity copy as one direct HBM->HBM DMA.

    alias_input=True means the caller donates x; copying onto the donated
    buffer is pure waste, so the identity is returned with no data movement.
    Small inputs fall back to a plain XLA copy unless force_kernel=True.
    """
    if x.size == 0:
        return x
    if alias_input:
        # Donated input: skip all data movement (matches the identity path).
        return x

    nbytes = int(x.size) * jnp.dtype(x.dtype).itemsize
    if nbytes < _SMALL_BYTES and not force_kernel:
        # Tiny arrays: fixed pallas_call + DMA setup overhead dominates.
        return jnp.copy(x)

    return pl.pallas_call(
        _hbm_copy_kernel,
        out_shape=jax.ShapeDtypeStruct(x.shape, x.dtype),
        in_specs=[pl.BlockSpec(memory_space=pl.ANY)],
        out_specs=pl.BlockSpec(memory_space=pl.ANY),
        scratch_shapes=[pltpu.SemaphoreType.DMA],
        cost_estimate=pl.CostEstimate(
            flops=0,
            transcendentals=0,
            bytes_accessed=2 * nbytes,
        ),
    )(x)


def custom_model_forward(x, *, materialize=False):
    """Pallas equivalent of CustomModel.forward (identity).

    Default path: return x directly (no kernel, no HBM traffic) — the optimal
    implementation of an identity forward. Set materialize=True to force a
    physical copy via the HBM->HBM DMA kernel (small inputs still short-circuit
    to a plain copy; see identity_copy_pallas for force_kernel).
    """
    if materialize:
        return identity_copy_pallas(x)
    return x


class CustomModelPallas:
    """Mirror of the PyTorch CustomModel: stores lr/activation, forward = identity."""

    def __init__(self, lr: float = 0.01, activation: str = "relu"):
        self.lr = lr
        self.activation = activation  # unused in forward, matching the reference

    def __call__(self, x, *, materialize=False):
        return custom_model_forward(x, materialize=materialize)


if __name__ == "__main__":
    key = jax.random.PRNGKey(0)
    # Small RGB-image-like input: batch=2, channels=4, spatial=16x16 (NCHW).
    x = jax.random.normal(key, (2, 4, 16, 16), dtype=jnp.float32)

    model = CustomModelPallas(lr=0.01, activation="relu")

    # Fast path (default): identity, no kernel launched, no data movement.
    y = jax.block_until_ready(model(x))
    assert y.shape == x.shape and y.dtype == x.dtype
    assert bool(jnp.all(y == x))

    # Materialized path on a small input: short-circuits to a plain XLA copy.
    y_small = jax.block_until_ready(model(x, materialize=True))
    assert y_small.shape == x.shape and y_small.dtype == x.dtype
    assert bool(jnp.all(y_small == x))

    # Explicitly exercise the Pallas HBM->HBM DMA kernel once (forced, since
    # the demo input is tiny and would otherwise take the small-input path).
    y_dma = jax.block_until_ready(identity_copy_pallas(x, force_kernel=True))
    assert y_dma.shape == x.shape and y_dma.dtype == x.dtype
    assert bool(jnp.all(y_dma == x))

    print("KERNEL_OK")
</pallas_src>

<mosaic_0001>
module attributes {stable_mosaic.version = 11 : i64} {
  func.func @_hbm_copy_kernel(%arg0: memref<2x4x16x16xf32, #tpu.memory_space<any>>, %arg1: memref<2x4x16x16xf32, #tpu.memory_space<any>>, %arg2: memref<!tpu.dma_semaphore, #tpu.memory_space<semaphore_mem>>) attributes {dimension_semantics = [], scalar_prefetch = 0 : i64, scratch_operands = 1 : i64, tpu.core_type = #tpu.core_type<tc>} {
    tpu.enqueue_dma source(%arg0 : memref<2x4x16x16xf32, #tpu.memory_space<any>>) target(%arg1 : memref<2x4x16x16xf32, #tpu.memory_space<any>>) target_semaphore(%arg2 : memref<!tpu.dma_semaphore, #tpu.memory_space<semaphore_mem>>)
    tpu.wait_dma2 semaphore(%arg2 : memref<!tpu.dma_semaphore, #tpu.memory_space<semaphore_mem>>) src(%arg0 : memref<2x4x16x16xf32, #tpu.memory_space<any>>) dst(%arg1 : memref<2x4x16x16xf32, #tpu.memory_space<any>>)
    return
  }
}

</mosaic_0001>

<bundles_post_ra>
// kernel: tpu_custom_call.1
= control target key start
LH: loop header
LB: loop body
LE: loop exit
PB: predicated region body
PF: predicated region fallthrough
CT: control target
= control target key end

     0   :  { %s36_s6 = smov [#allocation2]   ;;  %s37_s7 = smov [#allocation3]   ;;  %s55_s0 = inlined_call_operand.hbm [shape: f32[2,4,16,16], index: 0, kind: input, shape index: {}]   ;;  %s56_s1 = inlined_call_operand.hbm [shape: f32[2,4,16,16], index: 1, kind: output, shape index: {}]  }
   0x1   :  { %s38_s8 = smov 0  }
   0x2   :  { %18 = dma.general %s55_s0, 2048, %s56_s1, %s36_s6, %s37_s7, [#allocation4], %s38_s8, 0  }
   0x3   :  { %34 = dma.done.wait [#allocation2], 2048 }
   0x4   :  { %35 = vsyncadd [#allocation2], 4294965248 }
   0x5   :  { %24 = vsyncmov [#allocation2] }
   0x8   :  { %s25_s13 = vpop.sfrf %24 }
   0x9   :  { %p30_p0 = scmp.ne.s32.totalorder %s25_s13, 0 }
   0xb   :  { %29 = shalt.err (%p30_p0)  }

</bundles_post_ra>
